<compile_context>
chip_gen: v7x
topology: tpu7x:2x2x1
jax: 0.10.0
libtpu: 0.0.40
codegen_flags: <defaults>
</compile_context>

<pallas_src>
import functools

import jax
import jax.numpy as jnp
from jax.experimental import pallas as pl
from jax.experimental.pallas import tpu as pltpu


def _round_up(n, m):
    return ((n + m - 1) // m) * m


def emotion_classifier_kernel(
    x_ref,
    w1_ref, b1_ref,          # input_dim -> hidden
    w2_ref, b2_ref,          # hidden -> hidden // 2
    w3_ref, b3_ref,          # hidden // 2 -> hidden // 4
    wh_ref, bh_ref,          # fused heads: hidden // 4 -> (E | 1 | E)
    out_ref,                 # lane-dense slab [TB, OUT_W]
    *, num_emotions, pad,
):
    x = x_ref[...]

    # feature_extractor: Linear -> ReLU -> (Dropout=id) -> Linear -> ReLU ->
    #                    (Dropout=id) -> Linear -> ReLU
    h = jnp.dot(x, w1_ref[...], preferred_element_type=jnp.float32) + b1_ref[...]
    h = jnp.maximum(h, 0.0)
    h = jnp.dot(h, w2_ref[...], preferred_element_type=jnp.float32) + b2_ref[...]
    h = jnp.maximum(h, 0.0)
    feats = jnp.dot(h, w3_ref[...], preferred_element_type=jnp.float32) + b3_ref[...]
    feats = jnp.maximum(feats, 0.0)                                   # [TB, h4]

    # Fused heads: one MXU push producing [emotion_logits | conf | intensity].
    head = jnp.dot(feats, wh_ref[...], preferred_element_type=jnp.float32) + bh_ref[...]

    # Emotion head: stable softmax over the first E columns.
    logits = head[:, :num_emotions]
    m = jnp.max(logits, axis=-1, keepdims=True)
    e = jnp.exp(logits - m)
    probs = e * pl.reciprocal(jnp.sum(e, axis=-1, keepdims=True), approx=False)

    # Confidence + intensity heads share the sigmoid: columns [E : 2E+1].
    sig = 1.0 / (1.0 + jnp.exp(-head[:, num_emotions:]))

    # One lane-dense (multiple-of-128-wide) store; wrapper slices it apart.
    pieces = [feats, probs, sig]
    if pad > 0:
        pieces.append(jnp.zeros((x.shape[0], pad), jnp.float32))
    out_ref[...] = jnp.concatenate(pieces, axis=-1)


def emotion_classifier(x, params, *, block_b=512):
    B, input_dim = x.shape
    h4 = params["w3"].shape[1]
    E = params["we"].shape[1]

    # Fuse the three head projections (emotion | confidence | intensity).
    wh = jnp.concatenate([params["we"], params["wc"], params["wi"]], axis=1)
    bh = jnp.concatenate([params["be"], params["bc"], params["bi"]], axis=1)

    raw_w = h4 + 2 * E + 1
    out_w = _round_up(raw_w, 128)          # lane-dense output slab width
    pad = out_w - raw_w

    # Batch tiling: only M is tiled; tile is a multiple of 8 (sublane) and
    # capped so double-buffered x + slab stay far inside a 64 MiB VMEM budget.
    tb = min(block_b, _round_up(B, 8))
    b_pad = _round_up(B, tb)
    x_in = jnp.pad(x, ((0, b_pad - B), (0, 0))) if b_pad != B else x

    weights = (
        params["w1"], params["b1"],
        params["w2"], params["b2"],
        params["w3"], params["b3"],
        wh, bh,
    )
    resident = lambda a: pl.BlockSpec(a.shape, lambda i: (0, 0))  # stays in VMEM

    kernel = functools.partial(
        emotion_classifier_kernel, num_emotions=E, pad=pad)

    slab = pl.pallas_call(
        kernel,
        out_shape=jax.ShapeDtypeStruct((b_pad, out_w), jnp.float32),
        grid=(b_pad // tb,),
        in_specs=[pl.BlockSpec((tb, input_dim), lambda i: (i, 0))]
                 + [resident(a) for a in weights],
        out_specs=pl.BlockSpec((tb, out_w), lambda i: (i, 0)),
        compiler_params=pltpu.CompilerParams(
            dimension_semantics=("parallel",),
            vmem_limit_bytes=64 * 1024 * 1024,
        ),
    )(x_in, *weights)

    slab = slab[:B]
    feats = slab[:, :h4]
    probs = slab[:, h4:h4 + E]
    conf = slab[:, h4 + E:h4 + E + 1]
    inten = slab[:, h4 + E + 1:h4 + 2 * E + 1]
    return {
        "emotion_probs": probs,
        "confidence": conf,
        "intensity": inten,
        "features": feats,
    }


def init_params(key, input_dim, hidden_dim, num_emotions):
    """Deterministic synthetic parameters (weights stored [in, out])."""
    def linear(k, fan_in, fan_out):
        kw, kb = jax.random.split(k)
        scale = 1.0 / jnp.sqrt(jnp.float32(fan_in))
        w = jax.random.uniform(kw, (fan_in, fan_out), jnp.float32, -scale, scale)
        b = jax.random.uniform(kb, (1, fan_out), jnp.float32, -scale, scale)
        return w, b

    ks = jax.random.split(key, 6)
    h2, h4 = hidden_dim // 2, hidden_dim // 4
    w1, b1 = linear(ks[0], input_dim, hidden_dim)
    w2, b2 = linear(ks[1], hidden_dim, h2)
    w3, b3 = linear(ks[2], h2, h4)
    we, be = linear(ks[3], h4, num_emotions)
    wc, bc = linear(ks[4], h4, 1)
    wi, bi = linear(ks[5], h4, num_emotions)
    return dict(w1=w1, b1=b1, w2=w2, b2=b2, w3=w3, b3=b3,
                we=we, be=be, wc=wc, bc=bc, wi=wi, bi=bi)


def reference(x, p):
    h = jnp.maximum(x @ p["w1"] + p["b1"], 0.0)
    h = jnp.maximum(h @ p["w2"] + p["b2"], 0.0)
    f = jnp.maximum(h @ p["w3"] + p["b3"], 0.0)
    logits = f @ p["we"] + p["be"]
    probs = jax.nn.softmax(logits, axis=-1)
    conf = jax.nn.sigmoid(f @ p["wc"] + p["bc"])
    inten = jax.nn.sigmoid(f @ p["wi"] + p["bi"])
    return {"emotion_probs": probs, "confidence": conf,
            "intensity": inten, "features": f}


if __name__ == "__main__":
    # TODO(synk): nn.Dropout(0.2) is identity at inference; no RNG path implemented.
    B, input_dim, hidden_dim, num_emotions = 8, 64, 32, 27

    key = jax.random.PRNGKey(0)
    kx, kp = jax.random.split(key)
    x = jax.random.normal(kx, (B, input_dim), jnp.float32)
    params = init_params(kp, input_dim, hidden_dim, num_emotions)

    out = emotion_classifier(x, params)
    out = jax.tree_util.tree_map(jax.block_until_ready, out)

    ref = reference(x, params)
    for k in ("features", "emotion_probs", "confidence", "intensity"):
        assert out[k].shape == ref[k].shape, k
        assert jnp.allclose(out[k], ref[k], atol=1e-5, rtol=1e-5), k

    print("KERNEL_OK")
</pallas_src>

<mosaic_0001>
module attributes {stable_mosaic.version = 11 : i64} {
  func.func @emotion_classifier_kernel(%arg0: i32, %arg1: memref<8x64xf32, #tpu.memory_space<vmem>>, %arg2: memref<64x32xf32, #tpu.memory_space<vmem>>, %arg3: memref<1x32xf32, #tpu.memory_space<vmem>>, %arg4: memref<32x16xf32, #tpu.memory_space<vmem>>, %arg5: memref<1x16xf32, #tpu.memory_space<vmem>>, %arg6: memref<16x8xf32, #tpu.memory_space<vmem>>, %arg7: memref<1x8xf32, #tpu.memory_space<vmem>>, %arg8: memref<8x55xf32, #tpu.memory_space<vmem>>, %arg9: memref<1x55xf32, #tpu.memory_space<vmem>>, %arg10: memref<8x128xf32, #tpu.memory_space<vmem>>) attributes {dimension_semantics = [#tpu.dimension_semantics<parallel>], iteration_bounds = array<i64: 1>, scalar_prefetch = 0 : i64, scratch_operands = 0 : i64, tpu.core_type = #tpu.core_type<tc>, window_params = [{transform_indices = @transform_0, window_bounds = array<i64: 8, 64>}, {pipeline_mode = #tpu.pipeline_mode<synchronous>, transform_indices = @transform_1, window_bounds = array<i64: 64, 32>}, {pipeline_mode = #tpu.pipeline_mode<synchronous>, transform_indices = @transform_2, window_bounds = array<i64: 1, 32>}, {pipeline_mode = #tpu.pipeline_mode<synchronous>, transform_indices = @transform_3, window_bounds = array<i64: 32, 16>}, {pipeline_mode = #tpu.pipeline_mode<synchronous>, transform_indices = @transform_4, window_bounds = array<i64: 1, 16>}, {pipeline_mode = #tpu.pipeline_mode<synchronous>, transform_indices = @transform_5, window_bounds = array<i64: 16, 8>}, {pipeline_mode = #tpu.pipeline_mode<synchronous>, transform_indices = @transform_6, window_bounds = array<i64: 1, 8>}, {pipeline_mode = #tpu.pipeline_mode<synchronous>, transform_indices = @transform_7, window_bounds = array<i64: 8, 55>}, {pipeline_mode = #tpu.pipeline_mode<synchronous>, transform_indices = @transform_8, window_bounds = array<i64: 1, 55>}, {transform_indices = @transform_9, window_bounds = array<i64: 8, 128>}]} {
    %c0 = arith.constant 0 : index
    %c0_0 = arith.constant 0 : index
    %0 = vector.load %arg1[%c0, %c0_0] : memref<8x64xf32, #tpu.memory_space<vmem>>, vector<8x64xf32>
    %c0_1 = arith.constant 0 : index
    %c0_2 = arith.constant 0 : index
    %1 = vector.load %arg2[%c0_1, %c0_2] : memref<64x32xf32, #tpu.memory_space<vmem>>, vector<64x32xf32>
    %cst = arith.constant dense<0.000000e+00> : vector<8x32xf32>
    %2 = tpu.matmul %0, %1, %cst {dimension_numbers = #tpu.dot_dimension_numbers<[1], [0], [0], [1], [0, 0, 1, 1], [], []>} : vector<8x64xf32>, vector<64x32xf32>, vector<8x32xf32> -> vector<8x32xf32>
    %c0_3 = arith.constant 0 : index
    %c0_4 = arith.constant 0 : index
    %3 = vector.load %arg3[%c0_3, %c0_4] : memref<1x32xf32, #tpu.memory_space<vmem>>, vector<1x32xf32>
    %4 = vector.broadcast %3 : vector<1x32xf32> to vector<8x32xf32>
    %5 = arith.addf %2, %4 : vector<8x32xf32>
    %cst_5 = arith.constant 0.000000e+00 : f32
    %6 = vector.broadcast %cst_5 : f32 to vector<8x32xf32>
    %7 = arith.maximumf %5, %6 : vector<8x32xf32>
    %c0_6 = arith.constant 0 : index
    %c0_7 = arith.constant 0 : index
    %8 = vector.load %arg4[%c0_6, %c0_7] : memref<32x16xf32, #tpu.memory_space<vmem>>, vector<32x16xf32>
    %cst_8 = arith.constant dense<0.000000e+00> : vector<8x16xf32>
    %9 = tpu.matmul %7, %8, %cst_8 {dimension_numbers = #tpu.dot_dimension_numbers<[1], [0], [0], [1], [0, 0, 1, 1], [], []>} : vector<8x32xf32>, vector<32x16xf32>, vector<8x16xf32> -> vector<8x16xf32>
    %c0_9 = arith.constant 0 : index
    %c0_10 = arith.constant 0 : index
    %10 = vector.load %arg5[%c0_9, %c0_10] : memref<1x16xf32, #tpu.memory_space<vmem>>, vector<1x16xf32>
    %11 = vector.broadcast %10 : vector<1x16xf32> to vector<8x16xf32>
    %12 = arith.addf %9, %11 : vector<8x16xf32>
    %cst_11 = arith.constant 0.000000e+00 : f32
    %13 = vector.broadcast %cst_11 : f32 to vector<8x16xf32>
    %14 = arith.maximumf %12, %13 : vector<8x16xf32>
    %c0_12 = arith.constant 0 : index
    %c0_13 = arith.constant 0 : index
    %15 = vector.load %arg6[%c0_12, %c0_13] : memref<16x8xf32, #tpu.memory_space<vmem>>, vector<16x8xf32>
    %cst_14 = arith.constant dense<0.000000e+00> : vector<8x8xf32>
    %16 = tpu.matmul %14, %15, %cst_14 {dimension_numbers = #tpu.dot_dimension_numbers<[1], [0], [0], [1], [0, 0, 1, 1], [], []>} : vector<8x16xf32>, vector<16x8xf32>, vector<8x8xf32> -> vector<8x8xf32>
    %c0_15 = arith.constant 0 : index
    %c0_16 = arith.constant 0 : index
    %17 = vector.load %arg7[%c0_15, %c0_16] : memref<1x8xf32, #tpu.memory_space<vmem>>, vector<1x8xf32>
    %18 = vector.broadcast %17 : vector<1x8xf32> to vector<8x8xf32>
    %19 = arith.addf %16, %18 : vector<8x8xf32>
    %cst_17 = arith.constant 0.000000e+00 : f32
    %20 = vector.broadcast %cst_17 : f32 to vector<8x8xf32>
    %21 = arith.maximumf %19, %20 : vector<8x8xf32>
    %c0_18 = arith.constant 0 : index
    %c0_19 = arith.constant 0 : index
    %22 = vector.load %arg8[%c0_18, %c0_19] : memref<8x55xf32, #tpu.memory_space<vmem>>, vector<8x55xf32>
    %cst_20 = arith.constant dense<0.000000e+00> : vector<8x55xf32>
    %23 = tpu.matmul %21, %22, %cst_20 {dimension_numbers = #tpu.dot_dimension_numbers<[1], [0], [0], [1], [0, 0, 1, 1], [], []>} : vector<8x8xf32>, vector<8x55xf32>, vector<8x55xf32> -> vector<8x55xf32>
    %c0_21 = arith.constant 0 : index
    %c0_22 = arith.constant 0 : index
    %24 = vector.load %arg9[%c0_21, %c0_22] : memref<1x55xf32, #tpu.memory_space<vmem>>, vector<1x55xf32>
    %25 = vector.broadcast %24 : vector<1x55xf32> to vector<8x55xf32>
    %26 = arith.addf %23, %25 : vector<8x55xf32>
    %27 = vector.extract_strided_slice %26 {offsets = [0, 0], sizes = [8, 27], strides = [1, 1]} : vector<8x55xf32> to vector<8x27xf32>
    %cst_23 = arith.constant dense<0xFF800000> : vector<8xf32>
    %28 = vector.multi_reduction <maximumf>, %27, %cst_23 [1] : vector<8x27xf32> to vector<8xf32>
    %29 = vector.shape_cast %28 : vector<8xf32> to vector<8x1xf32>
    %30 = vector.broadcast %29 : vector<8x1xf32> to vector<8x27xf32>
    %31 = arith.subf %27, %30 : vector<8x27xf32>
    %32 = math.exp %31 : vector<8x27xf32>
    %cst_24 = arith.constant dense<0.000000e+00> : vector<8xf32>
    %33 = vector.multi_reduction <add>, %32, %cst_24 [1] : vector<8x27xf32> to vector<8xf32>
    %34 = vector.shape_cast %33 : vector<8xf32> to vector<8x1xf32>
    %35 = tpu.reciprocal %34 : vector<8x1xf32> -> vector<8x1xf32>
    %36 = vector.broadcast %35 : vector<8x1xf32> to vector<8x27xf32>
    %37 = arith.mulf %32, %36 : vector<8x27xf32>
    %38 = vector.extract_strided_slice %26 {offsets = [0, 27], sizes = [8, 28], strides = [1, 1]} : vector<8x55xf32> to vector<8x28xf32>
    %cst_25 = arith.constant 0.000000e+00 : f32
    %39 = vector.broadcast %cst_25 : f32 to vector<8x28xf32>
    %40 = arith.subf %39, %38 : vector<8x28xf32>
    %41 = math.exp %40 : vector<8x28xf32>
    %cst_26 = arith.constant 1.000000e+00 : f32
    %42 = vector.broadcast %cst_26 : f32 to vector<8x28xf32>
    %43 = arith.addf %42, %41 : vector<8x28xf32>
    %cst_27 = arith.constant 1.000000e+00 : f32
    %44 = vector.broadcast %cst_27 : f32 to vector<8x28xf32>
    %45 = arith.divf %44, %43 : vector<8x28xf32>
    %cst_28 = arith.constant 0.000000e+00 : f32
    %46 = vector.broadcast %cst_28 : f32 to vector<8x65xf32>
    %47 = tpu.concatenate %21, %37, %45, %46 in 1 : vector<8x8xf32>, vector<8x27xf32>, vector<8x28xf32>, vector<8x65xf32> -> vector<8x128xf32>
    %c0_29 = arith.constant 0 : index
    %c0_30 = arith.constant 0 : index
    %48 = vector.load %arg10[%c0_29, %c0_30] : memref<8x128xf32, #tpu.memory_space<vmem>>, vector<8x128xf32>
    tpu.vector_store %arg10[%c0_29, %c0_30], %47 {strides = array<i32>} : memref<8x128xf32, #tpu.memory_space<vmem>>, vector<8x128xf32>,
    return
  }
  func.func @transform_0(%arg0: i32) -> (i32, i32) {
    %c0_i32 = arith.constant 0 : i32
    %c0_i32_0 = arith.constant 0 : i32
    return %arg0, %c0_i32 : i32, i32
  }
  func.func @transform_1(%arg0: i32) -> (i32, i32) {
    %c0_i32 = arith.constant 0 : i32
    %c0_i32_0 = arith.constant 0 : i32
    %c0_i32_1 = arith.constant 0 : i32
    return %c0_i32, %c0_i32_0 : i32, i32
  }
  func.func @transform_2(%arg0: i32) -> (i32, i32) {
    %c0_i32 = arith.constant 0 : i32
    %c0_i32_0 = arith.constant 0 : i32
    %c0_i32_1 = arith.constant 0 : i32
    return %c0_i32, %c0_i32_0 : i32, i32
  }
  func.func @transform_3(%arg0: i32) -> (i32, i32) {
    %c0_i32 = arith.constant 0 : i32
    %c0_i32_0 = arith.constant 0 : i32
    %c0_i32_1 = arith.constant 0 : i32
    return %c0_i32, %c0_i32_0 : i32, i32
  }
  func.func @transform_4(%arg0: i32) -> (i32, i32) {
    %c0_i32 = arith.constant 0 : i32
    %c0_i32_0 = arith.constant 0 : i32
    %c0_i32_1 = arith.constant 0 : i32
    return %c0_i32, %c0_i32_0 : i32, i32
  }
  func.func @transform_5(%arg0: i32) -> (i32, i32) {
    %c0_i32 = arith.constant 0 : i32
    %c0_i32_0 = arith.constant 0 : i32
    %c0_i32_1 = arith.constant 0 : i32
    return %c0_i32, %c0_i32_0 : i32, i32
  }
  func.func @transform_6(%arg0: i32) -> (i32, i32) {
    %c0_i32 = arith.constant 0 : i32
    %c0_i32_0 = arith.constant 0 : i32
    %c0_i32_1 = arith.constant 0 : i32
    return %c0_i32, %c0_i32_0 : i32, i32
  }
  func.func @transform_7(%arg0: i32) -> (i32, i32) {
    %c0_i32 = arith.constant 0 : i32
    %c0_i32_0 = arith.constant 0 : i32
    %c0_i32_1 = arith.constant 0 : i32
    return %c0_i32, %c0_i32_0 : i32, i32
  }
  func.func @transform_8(%arg0: i32) -> (i32, i32) {
    %c0_i32 = arith.constant 0 : i32
    %c0_i32_0 = arith.constant 0 : i32
    %c0_i32_1 = arith.constant 0 : i32
    return %c0_i32, %c0_i32_0 : i32, i32
  }
  func.func @transform_9(%arg0: i32) -> (i32, i32) {
    %c0_i32 = arith.constant 0 : i32
    %c0_i32_0 = arith.constant 0 : i32
    return %arg0, %c0_i32 : i32, i32
  }
}

</mosaic_0001>

<bundles_post_ra>
// kernel: tpu_custom_call.1
= control target key start
LH: loop header
LB: loop body
LE: loop exit
PB: predicated region body
PF: predicated region fallthrough
CT: control target
= control target key end

     0   :  { %14 = vsyncpa [#allocation3], 0  ;;  %s1084_s0 = inlined_call_operand.hbm [shape: f32[8,64], index: 0, kind: input, shape index: {}]   ;;  %s1085_s1 = inlined_call_operand.hbm [shape: f32[64,32], index: 1, kind: input, shape index: {}]   ;;  %s1086_s2 = inlined_call_operand.hbm [shape: f32[1,32], index: 2, kind: input, shape index: {}]   ;;  %s1087_s3 = inlined_call_operand.hbm [shape: f32[32,16], index: 3, kind: input, shape index: {}]   ;;  %s1088_s4 = inlined_call_operand.hbm [shape: f32[1,16], index: 4, kind: input, shape index: {}]   ;;  %s1089_s5 = inlined_call_operand.hbm [shape: f32[16,8], index: 5, kind: input, shape index: {}]   ;;  %s1090_s6 = inlined_call_operand.hbm [shape: f32[1,8], index: 6, kind: input, shape index: {}]   ;;  %s1091_s7 = inlined_call_operand.hbm [shape: f32[8,55], index: 7, kind: input, shape index: {}]   ;;  %s1092_s8 = inlined_call_operand.hbm [shape: f32[1,55], index: 8, kind: input, shape index: {}]   ;;  %s1093_s9 = inlined_call_operand.hbm [shape: f32[8,128], index: 9, kind: output, shape index: {}]  }
   0x1   :  { %15 = vsyncpa [#allocation6], 0 }
   0x2   :  { %16 = vsyncpa [#allocation9], 0 }
   0x3   :  { %17 = vsyncpa [#allocation12], 0 }
   0x4   :  { %18 = vsyncpa [#allocation15], 0 }
   0x5   :  { %19 = vsyncpa [#allocation4], 0  ;;  %s882_s30 = smov [#allocation5]   ;;  %s650_s13 = scalar_lea.hbm %s1085_s1, 1024 }
   0x6   :  { %s35_s10 = sshll.u32 %s882_s30, 4  ;;  %p651_p0 = scmp.ne.s32.totalorder %s1085_s1, %s650_s13  ;;  %s36_s10 = int_to_ptr.vmem [resolvable:$true] %s35_s10 }
   0x7   :  { %p654_p1 = scmp.lt.u32.totalorder %s650_s13, %s1085_s1 }
   0x9   :  { %p656_p2 = pnand %p654_p1, %p651_p0 }
   0xb   :  { %659 = shalt.err (!%p656_p2)
}
   0xc   :  { %s660_s18 = scalar_lea.vmem %s36_s10, 1024  ;;  %p665_p4 = scmp.lt.s32.totalorder %s36_s10, %s36_s10 }
   0xd   :  { %p661_p3 = scmp.ne.s32.totalorder %s36_s10, %s660_s18  ;;  %p666_p5 = scmp.lt.s32.totalorder %s660_s18, %s660_s18 }
   0xf   :  { %p667_p6 = por %p666_p5, %p665_p4 }
  0x11   :  { %p668_p7 = pnand %p667_p6, %p661_p3 }
  0x13   :  { %671 = shalt.err (!%p668_p7)
}
  0x14   :  { %s883_s19 = smov 128   ;;  %s884_s20 = smov 8  }
  0x15   :  { %41 = dma.hbm_to_vmem [thread:$0]  %s1085_s1, 1024, %s36_s10, [#allocation6], %s883_s19, %s883_s19, %s884_s20  }
  0x16   :  { %s885_s23 = smov [#allocation8]   ;;  %s886_s25 = smov [#allocation11]  }
  0x17   :  { %s57_s24 = sshll.u32 %s885_s23, 4  ;;  %s79_s26 = sshll.u32 %s886_s25, 4  ;;  %s58_s24 = int_to_ptr.vmem [resolvable:$true] %s57_s24  ;;  %s80_s26 = int_to_ptr.vmem [resolvable:$true] %s79_s26 }
  0x18   :  { %s672_s29 = scalar_lea.hbm %s1087_s3, 512 }
  0x19   :  { %p673_p8 = scmp.ne.s32.totalorder %s1087_s3, %s672_s29  ;;  %p676_p9 = scmp.lt.u32.totalorder %s672_s29, %s1087_s3 }
  0x1b   :  { %p678_p10 = pnand %p676_p9, %p673_p8 }
  0x1d   :  { %681 = shalt.err (!%p678_p10)
}
  0x1e   :  { %s682_s1 = scalar_lea.vmem %s58_s24, 512  ;;  %p687_p12 = scmp.lt.s32.totalorder %s58_s24, %s58_s24 }
  0x1f   :  { %p683_p11 = scmp.ne.s32.totalorder %s58_s24, %s682_s1  ;;  %p688_p13 = scmp.lt.s32.totalorder %s682_s1, %s682_s1 }
  0x21   :  { %p689_p0 = por %p688_p13, %p687_p12 }
  0x23   :  { %p690_p1 = pnand %p689_p0, %p683_p11 }
  0x25   :  { %693 = shalt.err (!%p690_p1)
}
  0x26   :  { %63 = dma.hbm_to_vmem [thread:$0]  %s1087_s3, 512, %s58_s24, [#allocation9], %s883_s19, %s883_s19, %s884_s20  }
  0x27   :  { %s694_s17 = scalar_lea.hbm %s1089_s5, 256 }
  0x28   :  { %p695_p2 = scmp.ne.s32.totalorder %s1089_s5, %s694_s17  ;;  %p698_p3 = scmp.lt.u32.totalorder %s694_s17, %s1089_s5 }
  0x2a   :  { %p700_p4 = pnand %p698_p3, %p695_p2 }
  0x2c   :  { %703 = shalt.err (!%p700_p4)
}
  0x2d   :  { %s704_s25 = scalar_lea.vmem %s80_s26, 256  ;;  %p709_p6 = scmp.lt.s32.totalorder %s80_s26, %s80_s26 }
  0x2e   :  { %p705_p5 = scmp.ne.s32.totalorder %s80_s26, %s704_s25  ;;  %p710_p7 = scmp.lt.s32.totalorder %s704_s25, %s704_s25 }
  0x30   :  { %p711_p8 = por %p710_p7, %p709_p6 }
  0x32   :  { %p712_p9 = pnand %p711_p8, %p705_p5 }
  0x34   :  { %715 = shalt.err (!%p712_p9)
}
  0x35   :  { %85 = dma.hbm_to_vmem [thread:$0]  %s1089_s5, 256, %s80_s26, [#allocation12], %s883_s19, %s883_s19, %s884_s20  }
  0x36   :  { %s887_s27 = smov [#allocation14]   ;;  %s888_s29 = smov [#allocation2]  }
  0x37   :  { %s102_s28 = sshll.u32 %s887_s27, 4  ;;  %s26_s30 = sshll.u32 %s888_s29, 4  ;;  %s103_s28 = int_to_ptr.vmem [resolvable:$true] %s102_s28  ;;  %s27_s30 = int_to_ptr.vmem [resolvable:$true] %s26_s30 }
  0x38   :  { %s716_s13 = scalar_lea.hbm %s1091_s7, 128 }
  0x39   :  { %p717_p10 = scmp.ne.s32.totalorder %s1091_s7, %s716_s13  ;;  %p720_p11 = scmp.lt.u32.totalorder %s716_s13, %s1091_s7 }
  0x3b   :  { %p722_p12 = pnand %p720_p11, %p717_p10 }
  0x3d   :  { %725 = shalt.err (!%p722_p12)
}
  0x3e   :  { %s726_s5 = scalar_lea.vmem %s103_s28, 128  ;;  %p731_p0 = scmp.lt.s32.totalorder %s103_s28, %s103_s28 }
  0x3f   :  { %p727_p13 = scmp.ne.s32.totalorder %s103_s28, %s726_s5  ;;  %p732_p1 = scmp.lt.s32.totalorder %s726_s5, %s726_s5 }
  0x41   :  { %p733_p2 = por %p732_p1, %p731_p0 }
  0x43   :  { %p734_p3 = pnand %p733_p2, %p727_p13 }
  0x45   :  { %737 = shalt.err (!%p734_p3)
}
  0x46   :  { %105 = dma.hbm_to_vmem [thread:$0]  %s1091_s7, 128, %s103_s28, [#allocation15]  }
  0x47   :  { %s738_s18 = scalar_lea.hbm %s1084_s0, 128 }
  0x48   :  { %p739_p4 = scmp.ne.s32.totalorder %s1084_s0, %s738_s18  ;;  %p742_p5 = scmp.lt.u32.totalorder %s738_s18, %s1084_s0 }
  0x4a   :  { %p744_p6 = pnand %p742_p5, %p739_p4 }
  0x4c   :  { %747 = shalt.err (!%p744_p6)
}
  0x4d   :  { %s748_s3 = scalar_lea.vmem %s27_s30, 128  ;;  %p753_p8 = scmp.lt.s32.totalorder %s27_s30, %s27_s30 }
  0x4e   :  { %p749_p7 = scmp.ne.s32.totalorder %s27_s30, %s748_s3  ;;  %p754_p9 = scmp.lt.s32.totalorder %s748_s3, %s748_s3 }
  0x50   :  { %p755_p10 = por %p754_p9, %p753_p8 }
  0x52   :  { %p756_p11 = pnand %p755_p10, %p749_p7 }
  0x54   :  { %759 = shalt.err (!%p756_p11)
}
  0x55   :  { %29 = dma.hbm_to_vmem [thread:$0]  %s1084_s0, 128, %s27_s30, [#allocation3]  }
  0x56   :  { %s889_s27 = smov [#allocation7]   ;;  %s890_s29 = smov [#allocation10]  }
  0x57   :  { %s48_s28 = sshll.u32 %s889_s27, 4  ;;  %s70_s11 = sshll.u32 %s890_s29, 4  ;;  %s49_s28 = int_to_ptr.vmem [resolvable:$true] %s48_s28  ;;  %s71_s11 = int_to_ptr.vmem [resolvable:$true] %s70_s11 }
  0x58   :  { %s760_s1 = scalar_lea.hbm %s1086_s2, 16 }
  0x59   :  { %p761_p12 = scmp.ne.s32.totalorder %s1086_s2, %s760_s1  ;;  %p764_p13 = scmp.lt.u32.totalorder %s760_s1, %s1086_s2 }
  0x5b   :  { %p766_p0 = pnand %p764_p13, %p761_p12 }
  0x5d   :  { %769 = shalt.err (!%p766_p0)
}
  0x5e   :  { %s770_s0 = scalar_lea.vmem %s49_s28, 16  ;;  %s774_s30 = scalar_lea.vmem %s49_s28, 32 }
  0x5f   :  { %p771_p1 = scmp.ne.s32.totalorder %s49_s28, %s770_s0  ;;  %p775_p2 = scmp.lt.s32.totalorder %s49_s28, %s49_s28 }
  0x60   :  { %p776_p3 = scmp.lt.s32.totalorder %s774_s30, %s770_s0 }
  0x62   :  { %p777_p4 = por %p776_p3, %p775_p2 }
  0x64   :  { %p778_p5 = pnand %p777_p4, %p771_p1 }
  0x66   :  { %781 = shalt.err (!%p778_p5)
}
  0x67   :  { %51 = dma.hbm_to_vmem [thread:$0]  %s1086_s2, 16, %s49_s28, [#allocation6]  }
  0x68   :  { %s782_s18 = scalar_lea.hbm %s1088_s4, 16 }
  0x69   :  { %p783_p6 = scmp.ne.s32.totalorder %s1088_s4, %s782_s18  ;;  %p786_p7 = scmp.lt.u32.totalorder %s782_s18, %s1088_s4 }
  0x6b   :  { %p788_p8 = pnand %p786_p7, %p783_p6 }
  0x6d   :  { %791 = shalt.err (!%p788_p8)
}
  0x6e   :  { %s792_s3 = scalar_lea.vmem %s71_s11, 16  ;;  %s796_s7 = scalar_lea.vmem %s71_s11, 32 }
  0x6f   :  { %p793_p9 = scmp.ne.s32.totalorder %s71_s11, %s792_s3  ;;  %p797_p10 = scmp.lt.s32.totalorder %s71_s11, %s71_s11 }
  0x70   :  { %p798_p11 = scmp.lt.s32.totalorder %s796_s7, %s792_s3 }
  0x72   :  { %p799_p12 = por %p798_p11, %p797_p10 }
  0x74   :  { %p800_p13 = pnand %p799_p12, %p793_p9 }
  0x76   :  { %803 = shalt.err (!%p800_p13)
}
  0x77   :  { %73 = dma.hbm_to_vmem [thread:$0]  %s1088_s4, 16, %s71_s11, [#allocation9]  }
  0x78   :  { %s891_s27 = smov [#allocation13]   ;;  %s892_s29 = smov [#allocation16]  }
  0x79   :  { %s92_s28 = sshll.u32 %s891_s27, 4  ;;  %s112_s12 = sshll.u32 %s892_s29, 4  ;;  %s93_s28 = int_to_ptr.vmem [resolvable:$true] %s92_s28  ;;  %s113_s12 = int_to_ptr.vmem [resolvable:$true] %s112_s12 }
  0x7a   :  { %s804_s10 = scalar_lea.hbm %s1090_s6, 16 }
  0x7b   :  { %p805_p0 = scmp.ne.s32.totalorder %s1090_s6, %s804_s10  ;;  %p808_p1 = scmp.lt.u32.totalorder %s804_s10, %s1090_s6 }
  0x7d   :  { %p810_p2 = pnand %p808_p1, %p805_p0 }
  0x7f   :  { %813 = shalt.err (!%p810_p2)
}
  0x80   :  { %s814_s4 = scalar_lea.vmem %s93_s28, 16  ;;  %s818_s11 = scalar_lea.vmem %s93_s28, 32 }
  0x81   :  { %p815_p3 = scmp.ne.s32.totalorder %s93_s28, %s814_s4  ;;  %p819_p4 = scmp.lt.s32.totalorder %s93_s28, %s93_s28 }
  0x82   :  { %p820_p5 = scmp.lt.s32.totalorder %s818_s11, %s814_s4 }
  0x84   :  { %p821_p6 = por %p820_p5, %p819_p4 }
  0x86   :  { %p822_p7 = pnand %p821_p6, %p815_p3 }
  0x88   :  { %825 = shalt.err (!%p822_p7)
}
  0x89   :  { %95 = dma.hbm_to_vmem [thread:$0]  %s1090_s6, 16, %s93_s28, [#allocation12]  }
  0x8a   :  { %s826_s17 = scalar_lea.hbm %s1092_s8, 16 }
  0x8b   :  { %p827_p8 = scmp.ne.s32.totalorder %s1092_s8, %s826_s17  ;;  %p830_p9 = scmp.lt.u32.totalorder %s826_s17, %s1092_s8 }
  0x8d   :  { %p832_p10 = pnand %p830_p9, %p827_p8 }
  0x8f   :  { %835 = shalt.err (!%p832_p10)
}
  0x90   :  { %s836_s25 = scalar_lea.vmem %s113_s12, 16  ;;  %s840_s3 = scalar_lea.vmem %s113_s12, 32 }
  0x91   :  { %p837_p11 = scmp.ne.s32.totalorder %s113_s12, %s836_s25  ;;  %p841_p12 = scmp.lt.s32.totalorder %s113_s12, %s113_s12 }
  0x92   :  { %p842_p13 = scmp.lt.s32.totalorder %s840_s3, %s836_s25 }
  0x94   :  { %p843_p0 = por %p842_p13, %p841_p12 }
  0x96   :  { %p844_p1 = pnand %p843_p0, %p837_p11 }
  0x98   :  { %847 = shalt.err (!%p844_p1)
}
  0x99   :  { %115 = dma.hbm_to_vmem [thread:$0]  %s1092_s8, 16, %s113_s12, [#allocation15]  }
  0x9a   :  { %870 = dma.done.wait [#allocation3], 128  }
  0x9b   :  { %871 = vsyncadd [#allocation3], 4294967168 }
  0x9c   :  { %872 = dma.done.wait [#allocation6], 1040  }
  0x9d   :  { %873 = vsyncadd [#allocation6], 4294966256 }
  0x9e   :  { %874 = dma.done.wait [#allocation9], 528  }
  0x9f   :  { %875 = vsyncadd [#allocation9], 4294966768 }
  0xa0   :  { %876 = dma.done.wait [#allocation12], 272  }
  0xa1   :  { %877 = vsyncadd [#allocation12], 4294967024 }
  0xa2   :  { %878 = dma.done.wait [#allocation15], 144  }
  0xa3   :  { %879 = vsyncadd [#allocation15], 4294967152  ;;  %v893_v0 = vmov 0.0|0.0   ;;  %vm894_vm0 = vmmov 0   ;;  %v895_v1 = vmov 0.0   ;;  %v144_v2 = vld [vmem:[#allocation5] sm:$0xff] }
  0xa4   :  { %606 = vmatprep.subr.bf16.mxu0 %v893_v0  ;;  %580 = vmatprep.mubr.msk.f32.mxu0 %vm894_vm0, %v895_v1  ;;  %v145_v3 = vld [vmem:[#allocation5 + $0x8] sm:$0xff]  ;;  %v146_v4 = vld [vmem:[#allocation5 + $0x10] sm:$0xff]  ;;  %v147_v6 = vld [vmem:[#allocation5 + $0x18] sm:$0xff]  ;;  %vm159_vm1 = vcmask 523264   ;;  %vm245_vm2 = vcmask 261120   ;;  %vm329_vm3 = vcmask 130048  }
  0xa5   :  { %618 = vmatprep.subr.bf16.mxu1 %v893_v0  ;;  %591 = vmatprep.mubr.msk.f32.mxu1 %vm894_vm0, %v895_v1  ;;  %v607_v5 = vpack.c.bf16 %v145_v3, %v144_v2  ;;  %v610_v7 = vpack.c.bf16 %v147_v6, %v146_v4  ;;  %v234_v8 = vld [vmem:[#allocation8] sm:$0xff]  ;;  %v235_v9 = vld [vmem:[#allocation8 + $0x8] sm:$0xff]  ;;  %v151_v15 = vld [vmem:[#allocation5 + $0x38] sm:$0xff]  ;;  %vm412_vm4 = vcmask 64512   ;;  %vm486_vm5 = vcmask 220160   ;;  %s896_s8 = smov [#allocation17]  }
  0xa6   :  { %v148_v10 = vld [vmem:[#allocation5 + $0x20] sm:$0xff]  ;;  %v149_v11 = vld [vmem:[#allocation5 + $0x28] sm:$0xff]  ;;  %v619_v12 = vpack.c.bf16 %v235_v9, %v234_v8  ;;  %v150_v14 = vld [vmem:[#allocation5 + $0x30] sm:$0xff]  ;;  %vm513_vm6 = vcmask 285696   ;;  %s524_s2 = sshll.u32 %s896_s8, 4  ;;  %vm515_vm7 = vcmask 515072   ;;  %s525_s2 = int_to_ptr.vmem [resolvable:$true] %s524_s2 }
  0xa7   :  { %608 = vmatpush3.bf16.msra.mxu0 %v607_v5  ;;  %v613_v13 = vpack.c.bf16 %v149_v11, %v148_v10  ;;  %v616_v16 = vpack.c.bf16 %v151_v15, %v150_v14  ;;  %v143_v17 = vld [vmem:[#allocation2] sm:$0xff]  ;;  %v537_v21 = vld [vmem:[#allocation7] ss:$0 sm:$0xff]  ;;  %v320_v26 = vld [vmem:[#allocation11] sm:$0xff]  ;;  %s848_s24 = scalar_lea.vmem %s525_s2, 128  ;;  %p853_p3 = scmp.lt.s32.totalorder %s525_s2, %s525_s2 }
  0xa8   :  { %609 = vmatprep.subr.bf16.mxu0 %v893_v0  ;;  %620 = vmatpush3.bf16.msra.mxu1 %v619_v12  ;;  %v236_v18 = vld [vmem:[#allocation8 + $0x10] sm:$0xff]  ;;  %v237_v19 = vld [vmem:[#allocation8 + $0x18] sm:$0xff]  ;;  %v539_v29 = vld [vmem:[#allocation10] ss:$0 sm:$0xff]  ;;  %p849_p2 = scmp.ne.s32.totalorder %s525_s2, %s848_s24  ;;  %p854_p4 = scmp.lt.s32.totalorder %s848_s24, %s848_s24 }
  0xa9   :  { %621 = vmatprep.subr.bf16.mxu1 %v893_v0  ;;  %v622_v20 = vpack.c.bf16 %v237_v19, %v236_v18  ;;  %v321_v27 = vld [vmem:[#allocation11 + $0x8] sm:$0xff]  ;;  %v404_v34 = vld [vmem:[#allocation14] sm:$0xff]  ;;  %v541_v35 = vld [vmem:[#allocation13] ss:$0 sm:$0xff] }
  0xaa   :  { %v625_v28 = vpack.c.bf16 %v321_v27, %v320_v26  ;;  %v543_v40 = vld [vmem:[#allocation16] ss:$0 sm:$0xff]  ;;  %p855_p5 = por %p854_p4, %p853_p3 }
  0xab   :  { %611 = vmatpush3.bf16.msra.mxu0 %v610_v7 }
  0xac   :  { %612 = vmatprep.subr.bf16.mxu0 %v893_v0  ;;  %623 = vmatpush3.bf16.msra.mxu1 %v622_v20  ;;  %p856_p6 = pnand %p855_p5, %p849_p2 }
  0xad   :  { %624 = vmatprep.subr.bf16.mxu1 %v893_v0 }
  0xaf   :  { %614 = vmatpush3.bf16.msra.mxu0 %v613_v13 }
  0xb0   :  { %615 = vmatprep.subr.bf16.mxu0 %v893_v0 }
  0xb3   :  { %617 = vmatpush3.bf16.msra.mxu0 %v616_v16 }
  0xb6   :  { %581 = vmatmul.mubr.msk.f32.vlgmr.msra.gmra.mrb[0].mxu0 %vm159_vm1, %v143_v17 }
 0x189   :  { %v229_v22 = vpop.f32.mrb[0].mxu0 }
 0x18a   :  { %v230_v23 = vadd.f32 %v537_v21, %v229_v22  ;;  %v582_v24 = vpop.f32.mrb[1].mxu0 }
 0x18c   :  { %v233_v25 = vmax.f32 %v230_v23, 0.0 }
 0x18e   :  { %592 = vmatmul.mubr.msk.f32.vlgmr.msra.gmra.mrb[0].mxu1 %vm245_vm2, %v233_v25 }
 0x18f   :  { %598 = vmatprep.mubr.msk.f32.mxu1 %vm894_vm0, %v895_v1  ;;  %626 = vmatpush3.bf16.msra.mxu1 %v625_v28 }
 0x190   :  { %601 = vmatprep.subr.mxu1 %v895_v1 }
 0x261   :  { %v315_v30 = vpop.f32.mrb[0].mxu1 }
 0x262   :  { %v316_v31 = vadd.f32 %v539_v29, %v315_v30  ;;  %v593_v32 = vpop.f32.mrb[1].mxu1 }
 0x264   :  { %v319_v33 = vmax.f32 %v316_v31, 0.0 }
 0x266   :  { %599 = vmatmul.mubr.msk.f32.vlgmr.msra.gmra.mrb[2].mxu1 %vm329_vm3, %v319_v33 }
 0x267   :  { %603 = vmatprep.mubr.msk.f32.mxu1 %vm894_vm0, %v895_v1  ;;  %602 = vmatpush3.msra.mxu1 %v404_v34 }
 0x339   :  { %v399_v36 = vpop.f32.mrb[2].mxu1 }
 0x33a   :  { %v400_v37 = vadd.f32 %v541_v35, %v399_v36  ;;  %v600_v38 = vpop.f32.mrb[3].mxu1 }
 0x33c   :  { %v403_v39 = vmax.f32 %v400_v37, 0.0 }
 0x33e   :  { %604 = vmatmul.mubr.msk.f32.vlgmr.msra.gmra.mrb[4].mxu1 %vm412_vm4, %v403_v39 }
 0x411   :  { %v482_v41 = vpop.f32.mrb[4].mxu1 }
 0x412   :  { %v483_v42 = vadd.f32 %v543_v40, %v482_v41  ;;  %v605_v43 = vpop.f32.mrb[5].mxu1 }
 0x414   :  { %v487_v44 = vsel %vm486_vm5, %v483_v42, -inf  ;;  %v498_v50 = vsub.f32 0.0, %v483_v42 }
 0x415   :  { %488 = vmax.xlane.f32.xlu0 %v487_v44 }
 0x416   :  { %v499_v51 = vmul.f32 1.442695, %v498_v50 }
 0x4a2   :  { %v489_v45 = vpop.xlane.xlu0 %488 }
 0x4a3   :  { %v490_v46 = vsub.f32 %v483_v42, %v489_v45 }
 0x4a5   :  { %v491_v47 = vmul.f32 1.442695, %v490_v46 }
 0x4a7   :  { %642 = vpow2.f32 %v491_v47 }
 0x4a8   :  { %644 = vpow2.f32 %v499_v51 }
 0x4b1   :  { %v643_v48 = vpop.eup %642 }
 0x4b2   :  { %v493_v49 = vsel %vm486_vm5, %v643_v48, 0.0  ;;  %v645_v52 = vpop.eup %644 }
 0x4b3   :  { %494 = vadd.xlane.f32.xlu0 %v493_v49  ;;  %v501_v54 = vadd.f32 1.0, %v645_v52 }
 0x540   :  { %v495_v53 = vpop.xlane.xlu0 %494 }
 0x541   :  { %646 = vrcp.f32 %v495_v53 }
 0x542   :  { %648 = vrcp.f32 %v501_v54 }
 0x54b   :  { %v647_v55 = vpop.eup %646 }
 0x54c   :  { %v497_v56 = vmul.f32 %v647_v55, %v643_v48  ;;  %v649_v57 = vpop.eup %648 }
 0x54e   :  { %505 = vrot.lane.b32.xlu1 %v497_v56, %s884_s20 }
 0x552   :  { %509 = vrot.lane.b32.xlu1 %v649_v57, %s884_s20 }
 0x5c0   :  { %v506_v58 = vpop.permute.xlu1 %505 }
 0x5c1   :  { %v512_v59 = vsel %vm412_vm4, %v403_v39, %v506_v58 }
 0x5c4   :  { %v510_v60 = vpop.permute.xlu1 %509 }
 0x5c5   :  { %v514_v61 = vsel %vm513_vm6, %v512_v59, %v510_v60 }
 0x5c6   :  { %v516_v62 = vsel %vm515_vm7, %v514_v61, 0.0 }
 0x5c7   :  { %517 = vst [vmem:[#allocation17] sm:$0xff] %v516_v62 }
 0x5c8   :  { %859 = shalt.err (!%p856_p6)
}
 0x5c9   :  { %s860_s28 = scalar_lea.hbm %s1093_s9, 128 }
 0x5ca   :  { %p861_p7 = scmp.ne.s32.totalorder %s1093_s9, %s860_s28  ;;  %p864_p8 = scmp.lt.u32.totalorder %s860_s28, %s1093_s9 }
 0x5cc   :  { %p866_p9 = pnand %p864_p8, %p861_p7 }
 0x5ce   :  { %869 = shalt.err (!%p866_p9)
}
 0x5cf   :  { %527 = dma.vmem_to_hbm [thread:$0]  %s525_s2, 128, %s1093_s9, [#allocation4]  }
 0x5d0   :  { %880 = dma.done.wait [#allocation4], 128  }
 0x5d1   :  { %881 = vsyncadd [#allocation4], 4294967168 }
 0x5d2   :  { %531 = vsyncpa [#allocation3], 1 }
 0x5d3   :  { %532 = vsyncpa [#allocation6], 1 }
 0x5d4   :  { %533 = vsyncpa [#allocation9], 1 }
 0x5d5   :  { %534 = vsyncpa [#allocation12], 1 }
 0x5d6   :  { %535 = vsyncpa [#allocation15], 1 }
 0x5d7   :  { %536 = vsyncpa [#allocation4], 1 }

</bundles_post_ra>
